<compile_context>
chip_gen: v7x
topology: tpu7x:2x2x1
jax: 0.10.0
libtpu: 0.0.40
codegen_flags: <defaults>
</compile_context>

<pallas_src>
import jax
import jax.numpy as jnp
from jax.experimental import pallas as pl
from jax.experimental.pallas import tpu as pltpu

LANE = 128   # vreg lane width
SUB = 8      # f32 sublane tile


def _round_up(x, m):
    return ((x + m - 1) // m) * m


def make_vae_encoder(input_size, hidden_size, latent_size, batch):
    I, H, L = input_size, hidden_size, latent_size
    B = batch

    # ---- packed-parameter slab layout (single lane-dense (R, W) f32 array) ----
    W = max(_round_up(H, LANE), _round_up(2 * L, LANE))  # slab lane width (128)
    Ip = _round_up(I, SUB)                               # w1 rows, sublane aligned
    off_w1 = 0
    off_b1 = off_w1 + Ip          # fc1 bias (single valid row)
    off_wh = off_b1 + SUB         # fused head weights, W rows (K of 2nd matmul)
    off_bh = off_wh + W           # fused head bias (single valid row)
    R = off_bh + SUB              # total slab rows (176 at 32/64/16)

    def pack_params(w1, b1, wmu, bmu, wlv, blv):
        """One-time preprocessing: concat heads + zero-pad into one (R, W) slab.
        Call once when parameters are created/updated and reuse the result."""
        w1 = jnp.asarray(w1, jnp.float32).reshape(I, H)
        b1 = jnp.asarray(b1, jnp.float32).reshape(1, H)
        wh = jnp.concatenate([jnp.asarray(wmu, jnp.float32).reshape(H, L),
                              jnp.asarray(wlv, jnp.float32).reshape(H, L)], axis=1)
        bh = jnp.concatenate([jnp.asarray(bmu, jnp.float32).reshape(1, L),
                              jnp.asarray(blv, jnp.float32).reshape(1, L)], axis=1)
        slab = jnp.zeros((R, W), jnp.float32)
        slab = slab.at[off_w1:off_w1 + I, :H].set(w1)
        slab = slab.at[off_b1:off_b1 + 1, :H].set(b1)
        slab = slab.at[off_wh:off_wh + H, :2 * L].set(wh)
        slab = slab.at[off_bh:off_bh + 1, :2 * L].set(bh)
        return slab

    def kernel(x_ref, p_ref, mu_ref, lv_ref):
        # Static views into the packed slab (zero runtime cost; offsets are
        # sublane-aligned constants).
        w1 = p_ref[off_w1:off_w1 + Ip, :]    # (Ip, W); cols >= H are zero
        b1 = p_ref[off_b1:off_b1 + 1, :]     # (1, W)
        wh = p_ref[off_wh:off_wh + W, :]     # (W, W); rows >= H are zero
        bh = p_ref[off_bh:off_bh + 1, :]     # (1, W)

        x = x_ref[...]
        # fc1 + ReLU; padded lanes stay exactly zero (zero weights + zero bias),
        # so the zero-padded rows of `wh` contribute nothing below.
        h = jnp.maximum(
            jnp.dot(x, w1, preferred_element_type=jnp.float32,
                    precision=jax.lax.Precision.HIGHEST) + b1, 0.0)
        # Fused heads: one MXU push producing [mu | logvar | 0-pad] lanes.
        heads = jnp.dot(h, wh, preferred_element_type=jnp.float32,
                        precision=jax.lax.Precision.HIGHEST) + bh
        mu_ref[...] = heads[:, :L].astype(mu_ref.dtype)
        lv_ref[...] = heads[:, L:2 * L].astype(lv_ref.dtype)

    # Whole-array blocks (full array dims satisfy the (8,128) rule).
    full = lambda shape: pl.BlockSpec(shape, lambda: tuple(0 for _ in shape))

    flops = 2 * B * (Ip * W + W * W)
    bytes_accessed = 4 * (B * Ip + R * W + 2 * B * L)

    call = pl.pallas_call(
        kernel,
        out_shape=(jax.ShapeDtypeStruct((B, L), jnp.float32),
                   jax.ShapeDtypeStruct((B, L), jnp.float32)),
        grid_spec=pltpu.PrefetchScalarGridSpec(
            num_scalar_prefetch=0,
            grid=(),
            in_specs=[full((B, Ip)), full((R, W))],
            out_specs=(full((B, L)), full((B, L))),
        ),
        cost_estimate=pl.CostEstimate(flops=flops, transcendentals=0,
                                      bytes_accessed=bytes_accessed),
    )

    def forward(x, packed_params):
        if I != Ip:  # static condition; a no-op at the shapes used here
            x = jnp.pad(x, ((0, 0), (0, Ip - I)))
        return call(x, packed_params)

    return forward, pack_params


def init_params(key, input_size, hidden_size, latent_size):
    """Deterministic PyTorch-style Linear init: U(-1/sqrt(fan_in), 1/sqrt(fan_in)).
    Weights are stored transposed as (in, out) relative to nn.Linear's (out, in)."""
    ks = jax.random.split(key, 6)

    def linear(kw, kb, fan_in, fan_out):
        bound = 1.0 / jnp.sqrt(fan_in)
        w = jax.random.uniform(kw, (fan_in, fan_out), jnp.float32, -bound, bound)
        b = jax.random.uniform(kb, (1, fan_out), jnp.float32, -bound, bound)
        return w, b

    w1, b1 = linear(ks[0], ks[1], input_size, hidden_size)
    wmu, bmu = linear(ks[2], ks[3], hidden_size, latent_size)
    wlv, blv = linear(ks[4], ks[5], hidden_size, latent_size)
    return w1, b1, wmu, bmu, wlv, blv


if __name__ == "__main__":
    input_size, hidden_size, latent_size = 32, 64, 16
    batch = 8

    key = jax.random.PRNGKey(0)
    k_x, k_p = jax.random.split(key)
    x = jax.random.normal(k_x, (batch, input_size), dtype=jnp.float32)
    w1, b1, wmu, bmu, wlv, blv = init_params(k_p, input_size, hidden_size, latent_size)

    forward, pack_params = make_vae_encoder(input_size, hidden_size, latent_size, batch)
    # One-time parameter packing (cached / reused across every forward call).
    params = jax.block_until_ready(pack_params(w1, b1, wmu, bmu, wlv, blv))

    mu, logvar = forward(x, params)
    jax.block_until_ready((mu, logvar))

    # Pure-JAX reference (strict f32 matmuls, matching the HIGHEST-precision kernel).
    hp = jax.lax.Precision.HIGHEST
    h_ref = jnp.maximum(jnp.dot(x, w1, precision=hp) + b1, 0.0)
    mu_ref = jnp.dot(h_ref, wmu, precision=hp) + bmu
    lv_ref = jnp.dot(h_ref, wlv, precision=hp) + blv

    assert mu.shape == (batch, latent_size) and logvar.shape == (batch, latent_size)
    assert jnp.allclose(mu, mu_ref, atol=1e-5, rtol=1e-5)
    assert jnp.allclose(logvar, lv_ref, atol=1e-5, rtol=1e-5)

    print("KERNEL_OK")
</pallas_src>

<mosaic_0001>
module attributes {stable_mosaic.version = 11 : i64} {
  func.func @kernel(%arg0: memref<8x32xf32, #tpu.memory_space<vmem>>, %arg1: memref<176x128xf32, #tpu.memory_space<vmem>>, %arg2: memref<8x16xf32, #tpu.memory_space<vmem>>, %arg3: memref<8x16xf32, #tpu.memory_space<vmem>>) attributes {dimension_semantics = [], scalar_prefetch = 0 : i64, scratch_operands = 0 : i64, tpu.core_type = #tpu.core_type<tc>} {
    %c0 = arith.constant 0 : index
    %c0_0 = arith.constant 0 : index
    %0 = vector.load %arg1[%c0, %c0_0] : memref<176x128xf32, #tpu.memory_space<vmem>>, vector<32x128xf32>
    %c32 = arith.constant 32 : index
    %c0_1 = arith.constant 0 : index
    %1 = vector.load %arg1[%c32, %c0_1] : memref<176x128xf32, #tpu.memory_space<vmem>>, vector<1x128xf32>
    %c40 = arith.constant 40 : index
    %c0_2 = arith.constant 0 : index
    %2 = vector.load %arg1[%c40, %c0_2] : memref<176x128xf32, #tpu.memory_space<vmem>>, vector<128x128xf32>
    %c168 = arith.constant 168 : index
    %c0_3 = arith.constant 0 : index
    %3 = vector.load %arg1[%c168, %c0_3] : memref<176x128xf32, #tpu.memory_space<vmem>>, vector<1x128xf32>
    %c0_4 = arith.constant 0 : index
    %c0_5 = arith.constant 0 : index
    %4 = vector.load %arg0[%c0_4, %c0_5] : memref<8x32xf32, #tpu.memory_space<vmem>>, vector<8x32xf32>
    %cst = arith.constant dense<0.000000e+00> : vector<8x128xf32>
    %5 = tpu.matmul %4, %0, %cst {dimension_numbers = #tpu.dot_dimension_numbers<[1], [0], [0], [1], [0, 0, 1, 1], [], []>, precision = #tpu.contract_precision<fp32>} : vector<8x32xf32>, vector<32x128xf32>, vector<8x128xf32> -> vector<8x128xf32>
    %6 = vector.broadcast %1 : vector<1x128xf32> to vector<8x128xf32>
    %7 = arith.addf %5, %6 : vector<8x128xf32>
    %cst_6 = arith.constant 0.000000e+00 : f32
    %8 = vector.broadcast %cst_6 : f32 to vector<8x128xf32>
    %9 = arith.maximumf %7, %8 : vector<8x128xf32>
    %cst_7 = arith.constant dense<0.000000e+00> : vector<8x128xf32>
    %10 = tpu.matmul %9, %2, %cst_7 {dimension_numbers = #tpu.dot_dimension_numbers<[1], [0], [0], [1], [0, 0, 1, 1], [], []>, precision = #tpu.contract_precision<fp32>} : vector<8x128xf32>, vector<128x128xf32>, vector<8x128xf32> -> vector<8x128xf32>
    %11 = vector.broadcast %3 : vector<1x128xf32> to vector<8x128xf32>
    %12 = arith.addf %10, %11 : vector<8x128xf32>
    %13 = vector.extract_strided_slice %12 {offsets = [0, 0], sizes = [8, 16], strides = [1, 1]} : vector<8x128xf32> to vector<8x16xf32>
    %c0_8 = arith.constant 0 : index
    %c0_9 = arith.constant 0 : index
    %14 = vector.load %arg2[%c0_8, %c0_9] : memref<8x16xf32, #tpu.memory_space<vmem>>, vector<8x16xf32>
    tpu.vector_store %arg2[%c0_8, %c0_9], %13 {strides = array<i32>} : memref<8x16xf32, #tpu.memory_space<vmem>>, vector<8x16xf32>,
    %15 = vector.extract_strided_slice %12 {offsets = [0, 16], sizes = [8, 16], strides = [1, 1]} : vector<8x128xf32> to vector<8x16xf32>
    %c0_10 = arith.constant 0 : index
    %c0_11 = arith.constant 0 : index
    %16 = vector.load %arg3[%c0_10, %c0_11] : memref<8x16xf32, #tpu.memory_space<vmem>>, vector<8x16xf32>
    tpu.vector_store %arg3[%c0_10, %c0_11], %15 {strides = array<i32>} : memref<8x16xf32, #tpu.memory_space<vmem>>, vector<8x16xf32>,
    return
  }
}

</mosaic_0001>

<bundles_post_ra>
// kernel: tpu_custom_call.1
= control target key start
LH: loop header
LB: loop body
LE: loop exit
PB: predicated region body
PF: predicated region fallthrough
CT: control target
= control target key end

     0   :  { %9 = vsyncpa [#allocation3], 0  ;;  %s2444_s0 = inlined_call_operand.hbm [shape: f32[8,32], index: 0, kind: input, shape index: {}]   ;;  %s2445_s1 = inlined_call_operand.hbm [shape: f32[176,128], index: 1, kind: input, shape index: {}]   ;;  %s2446_s2 = inlined_call_operand.hbm [shape: f32[8,16], index: 2, kind: output, shape index: {0}]   ;;  %s2447_s3 = inlined_call_operand.hbm [shape: f32[8,16], index: 3, kind: output, shape index: {1}]  }
   0x1   :  { %10 = vsyncpa [#allocation6], 0 }
   0x2   :  { %11 = vsyncpa [#allocation4], 0 }
   0x3   :  { %12 = vsyncpa [#allocation9], 0  ;;  %s1957_s12 = smov [#allocation2]   ;;  %s1958_s14 = smov [#allocation5]  }
   0x4   :  { %s19_s13 = sshll.u32 %s1957_s12, 4  ;;  %s28_s15 = sshll.u32 %s1958_s14, 4  ;;  %s20_s13 = int_to_ptr.vmem [resolvable:$true] %s19_s13  ;;  %s1987_s15 = int_to_ptr.vmem [resolvable:$true] %s28_s15 }
   0x5   :  { %s1861_s18 = scalar_lea.hbm %s2444_s0, 128 }
   0x6   :  { %p1862_p0 = scmp.ne.s32.totalorder %s2444_s0, %s1861_s18  ;;  %p1865_p1 = scmp.lt.u32.totalorder %s1861_s18, %s2444_s0 }
   0x8   :  { %p1867_p2 = pnand %p1865_p1, %p1862_p0 }
   0xa   :  { %1870 = shalt.err (!%p1867_p2)
}
   0xb   :  { %s1871_s23 = scalar_lea.vmem %s20_s13, 128  ;;  %p1876_p4 = scmp.lt.s32.totalorder %s20_s13, %s20_s13 }
   0xc   :  { %p1872_p3 = scmp.ne.s32.totalorder %s20_s13, %s1871_s23  ;;  %p1877_p5 = scmp.lt.s32.totalorder %s1871_s23, %s1871_s23 }
   0xe   :  { %p1878_p6 = por %p1877_p5, %p1876_p4 }
  0x10   :  { %p1879_p7 = pnand %p1878_p6, %p1872_p3 }
  0x12   :  { %1882 = shalt.err (!%p1879_p7)
}
  0x13   :  { %22 = dma.hbm_to_vmem [thread:$0]  %s2444_s0, 128, %s20_s13, [#allocation3]  }
  0x14   :  { %s1883_s28 = scalar_lea.hbm %s2445_s1, 2816 }
  0x15   :  { %p1884_p8 = scmp.ne.s32.totalorder %s2445_s1, %s1883_s28  ;;  %p1887_p9 = scmp.lt.u32.totalorder %s1883_s28, %s2445_s1 }
  0x17   :  { %p1889_p10 = pnand %p1887_p9, %p1884_p8 }
  0x19   :  { %1892 = shalt.err (!%p1889_p10)
}
  0x1a   :  { %s1893_s6 = scalar_lea.vmem %s1987_s15, 2816  ;;  %p1898_p12 = scmp.lt.s32.totalorder %s1987_s15, %s1987_s15 }
  0x1b   :  { %p1894_p11 = scmp.ne.s32.totalorder %s1987_s15, %s1893_s6  ;;  %p1899_p13 = scmp.lt.s32.totalorder %s1893_s6, %s1893_s6 }
  0x1d   :  { %p1900_p0 = por %p1899_p13, %p1898_p12 }
  0x1f   :  { %p1901_p1 = pnand %p1900_p0, %p1894_p11 }
  0x21   :  { %1904 = shalt.err (!%p1901_p1)
}
  0x22   :  { %s1959_s0 = smov 128   ;;  %s1960_s7 = smov 8  }
  0x23   :  { %34 = dma.hbm_to_vmem [thread:$0]  %s2445_s1, 2816, %s1987_s15, [#allocation6], %s1959_s0, %s1959_s0, %s1960_s7  }
  0x24   :  { %1949 = dma.done.wait [#allocation3], 128  }
  0x25   :  { %1950 = vsyncadd [#allocation3], 4294967168 }
  0x26   :  { %1951 = dma.done.wait [#allocation6], 2816  }
  0x27   :  { %1952 = vsyncadd [#allocation6], 4294964480  ;;  %v1961_v0 = vmov 0.0|0.0   ;;  %vm1962_vm0 = vmmov 0   ;;  %v1963_v1 = vmov 0.0   ;;  %vm68_vm1 = vcmask 261120  }
  0x28   :  { %1650 = vmatprep.subr.bf16.mxu0 %v1961_v0  ;;  %1382 = vmatprep.mubr.msk.f32.mxu0 %vm1962_vm0, %v1963_v1  ;;  %v41_v2 = vld [vmem:[#allocation5] sm:$0xff]  ;;  %v42_v3 = vld [vmem:[#allocation5 + $0x8] sm:$0xff]  ;;  %v43_v4 = vld [vmem:[#allocation5 + $0x10] sm:$0xff]  ;;  %s1964_s1 = smov [#allocation7]   ;;  %vm1203_vm2 = vcmask 130048   ;;  %s1965_s11 = smov 112  }
  0x29   :  { %1734 = vmatprep.subr.bf16.mxu1 %v1961_v0  ;;  %1542 = vmatprep.mubr.msk.f32.mxu1 %vm1962_vm0, %v1963_v1  ;;  %v73_v5 = vand.u32 4294901760, %v41_v2  ;;  %v76_v6 = vand.u32 4294901760, %v42_v3  ;;  %v44_v7 = vld [vmem:[#allocation5 + $0x18] sm:$0xff]  ;;  %v79_v8 = vand.u32 4294901760, %v43_v4  ;;  %v2024_v10 = vld [vmem:[#allocation5 + $0x28] sm:$0xff]  ;;  %v2026_v13 = vld [vmem:[#allocation5 + $0x30] sm:$0xff] }
  0x2a   :  { %v63_v9 = vld [vmem:[#allocation2] sm:$0xff]  ;;  %v82_v11 = vand.u32 4294901760, %v44_v7  ;;  %v563_v14 = vand.u32 4294901760, %v2024_v10  ;;  %v566_v25 = vand.u32 4294901760, %v2026_v13  ;;  %v2069_v33 = vld [vmem:[#allocation5 + $0x40] sm:$0xff]  ;;  %v2087_v42 = vld [vmem:[#allocation5 + $0x48] sm:$0xff] }
  0x2b   :  { %v70_v12 = vsel %vm68_vm1, %v63_v9, 0  ;;  %v2029_v15 = vpack.c.bf16 %v76_v6, %v73_v5  ;;  %v2031_v16 = vsub.f32 %v41_v2, %v73_v5  ;;  %v2033_v17 = vsub.f32 %v42_v3, %v76_v6  ;;  %v2067_v32 = vld [vmem:[#allocation5 + $0x38] sm:$0xff]  ;;  %v2089_v43 = vld [vmem:[#allocation5 + $0x50] sm:$0xff]  ;;  %v2095_v49 = vld [vmem:[#allocation5 + $0x60] sm:$0xff]  ;;  %s1216_s10 = sshll.u32 %s1964_s1, 4  ;;  %s1217_s10 = int_to_ptr.vmem [resolvable:$true] %s1216_s10 }
  0x2c   :  { %v2035_v18 = vsub.f32 %v43_v4, %v79_v8  ;;  %v2037_v19 = vpack.c.bf16 %v82_v11, %v79_v8  ;;  %v2039_v20 = vsub.f32 %v44_v7, %v82_v11  ;;  %v2041_v21 = vand.u32 4294901760, %v70_v12  ;;  %v2091_v44 = vld [vmem:[#allocation5 + $0x58] sm:$0xff]  ;;  %v2110_v56 = vld [vmem:[#allocation5 + $0x68] sm:$0xff]  ;;  %v2116_v59 = vld [vmem:[#allocation5 + $0x70] sm:$0xff]  ;;  %s1905_s12 = scalar_lea.vmem %s1217_s10, 128  ;;  %p1910_p3 = scmp.lt.s32.totalorder %s1217_s10, %s1217_s10 }
  0x2d   :  { %1652 = vmatpush3.bf16.msra.mxu0 %v2029_v15  ;;  %v154_v22 = vand.u32 4294901760, %v2031_v16  ;;  %v161_v23 = vand.u32 4294901760, %v2033_v17  ;;  %v2065_v31 = vsub.f32 %v2024_v10, %v563_v14  ;;  %v2079_v38 = vsub.f32 %v2026_v13, %v566_v25  ;;  %v2145_v6 = vld [vmem:[#allocation5 + $0x78] sm:$0xff]  ;;  %v2148_v7 = vld [vmem:[#allocation5 + $0x80] sm:$0xff]  ;;  %p1906_p2 = scmp.ne.s32.totalorder %s1217_s10, %s1905_s12  ;;  %p1911_p4 = scmp.lt.s32.totalorder %s1905_s12, %s1905_s12 }
  0x2e   :  { %v168_v24 = vand.u32 4294901760, %v2035_v18  ;;  %1653 = vmatprep.subr.bf16.mxu0 %v1961_v0  ;;  %v2050_v26 = vsub.f32 %v70_v12, %v2041_v21  ;;  %v175_v27 = vand.u32 4294901760, %v2039_v20  ;;  %v569_v40 = vand.u32 4294901760, %v2067_v32 }
  0x2f   :  { %v155_v28 = vsub.f32 %v2031_v16, %v154_v22  ;;  %v162_v29 = vsub.f32 %v2033_v17, %v161_v23  ;;  %v572_v41 = vand.u32 4294901760, %v2069_v33  ;;  %v1735_v48 = vpack.c.bf16 %v2079_v38, %v2065_v31  ;;  %p1912_p5 = por %p1911_p4, %p1910_p3 }
  0x30   :  { %v169_v30 = vsub.f32 %v2035_v18, %v168_v24  ;;  %v143_v34 = vand.u32 4294901760, %v2050_v26  ;;  %v176_v35 = vsub.f32 %v2039_v20, %v175_v27  ;;  %v2100_v51 = vsub.f32 %v2067_v32, %v569_v40 }
  0x31   :  { %1655 = vmatpush3.bf16.msra.mxu0 %v2037_v19  ;;  %v156_v36 = vand.u32 4294901760, %v155_v28  ;;  %v163_v37 = vand.u32 4294901760, %v162_v29  ;;  %v2105_v52 = vsub.f32 %v2069_v33, %v572_v41  ;;  %1736 = vmatpush3.bf16.msra.mxu1 %v1735_v48  ;;  %v575_v53 = vand.u32 4294901760, %v2087_v42  ;;  %p1913_p6 = pnand %p1912_p5, %p1906_p2 }
  0x32   :  { %v144_v39 = vsub.f32 %v2050_v26, %v143_v34  ;;  %1656 = vmatprep.subr.bf16.mxu0 %v1961_v0  ;;  %v170_v46 = vand.u32 4294901760, %v169_v30  ;;  %v177_v47 = vand.u32 4294901760, %v176_v35  ;;  %v578_v54 = vand.u32 4294901760, %v2089_v43  ;;  %1737 = vmatprep.subr.bf16.mxu1 %v1961_v0 }
  0x33   :  { %v1657_v45 = vpack.c.bf16 %v163_v37, %v156_v36  ;;  %v581_v55 = vand.u32 4294901760, %v2091_v44  ;;  %v1738_v57 = vpack.c.bf16 %v2105_v52, %v2100_v51  ;;  %v584_v58 = vand.u32 4294901760, %v2095_v49 }
  0x34   :  { %v145_v50 = vand.u32 4294901760, %v144_v39  ;;  %v1660_v60 = vpack.c.bf16 %v177_v47, %v170_v46  ;;  %v2123_v61 = vsub.f32 %v2087_v42, %v575_v53  ;;  %v2128_v62 = vsub.f32 %v2089_v43, %v578_v54 }
  0x35   :  { %v587_v63 = vand.u32 4294901760, %v2110_v56  ;;  %1739 = vmatpush3.bf16.msra.mxu1 %v1738_v57  ;;  %v2137_v3 = vsub.f32 %v2091_v44, %v581_v55  ;;  %v2142_v4 = vsub.f32 %v2095_v49, %v584_v58  ;;  %v590_v5 = vand.u32 4294901760, %v2116_v59 }
  0x36   :  { %1383 = vmatmul.mubr.f32.vlgmr.msra.gmra.mrb[0].mxu0 %v145_v50  ;;  %v1741_v2 = vpack.c.bf16 %v2128_v62, %v2123_v61  ;;  %1740 = vmatprep.subr.bf16.mxu1 %v1961_v0  ;;  %v1663_v8 = vpack.c.bf16 %v2033_v17, %v2031_v16  ;;  %v593_v9 = vand.u32 4294901760, %v2145_v6  ;;  %v596_v29 = vand.u32 4294901760, %v2148_v7  ;;  %v58_v17 = vld [vmem:[#allocation5 + $0x88] sm:$0xff] }
  0x37   :  { %1658 = vmatpush3.bf16.msra.mxu0 %v1657_v45  ;;  %1393 = vmatprep.mubr.msk.f32.mxu0 %vm1962_vm0, %v1963_v1  ;;  %v1744_v11 = vpack.c.bf16 %v2142_v4, %v2137_v3  ;;  %v2159_v12 = vsub.f32 %v2110_v56, %v587_v63  ;;  %v2164_v28 = vsub.f32 %v2116_v59, %v590_v5 }
  0x38   :  { %1659 = vmatprep.subr.bf16.mxu0 %v1961_v0  ;;  %v1666_v30 = vpack.c.bf16 %v2039_v20, %v2035_v18  ;;  %v2179_v36 = vsub.f32 %v2145_v6, %v593_v9  ;;  %v2184_v37 = vsub.f32 %v2148_v7, %v596_v29  ;;  %v1675_v45 = vpack.c.bf16 %v161_v23, %v154_v22  ;;  %v59_v18 = vld [vmem:[#allocation5 + $0x90] sm:$0xff]  ;;  %v60_v23 = vld [vmem:[#allocation5 + $0x98] sm:$0xff] }
  0x39   :  { %1742 = vmatpush3.bf16.msra.mxu1 %v1741_v2  ;;  %v1747_v35 = vpack.c.bf16 %v2164_v28, %v2159_v12  ;;  %v1678_v46 = vpack.c.bf16 %v175_v27, %v168_v24  ;;  %v2223_v16 = vpack.c.bf16 %v566_v25, %v563_v14  ;;  %v2242_v10 = vpack.c.bf16 %v578_v54, %v575_v53  ;;  %v61_v24 = vld [vmem:[#allocation5 + $0xa0] sm:$0xff] }
  0x3a   :  { %1743 = vmatprep.subr.bf16.mxu1 %v1961_v0  ;;  %v1750_v39 = vpack.c.bf16 %v2184_v37, %v2179_v36  ;;  %v2250_v13 = vpack.c.bf16 %v584_v58, %v581_v55  ;;  %v2258_v14 = vpack.c.bf16 %v590_v5, %v587_v63  ;;  %v602_v20 = vand.u32 4294901760, %v59_v18  ;;  %v1240_v5 = vld [vmem:[#allocation5 + $0x20] ss:$0 sm:$0xff] }
  0x3b   :  { %1661 = vmatpush3.bf16.msra.mxu0 %v1660_v60  ;;  %v608_v27 = vand.u32 4294901760, %v61_v24  ;;  %v2267_v32 = vpack.c.bf16 %v596_v29, %v593_v9  ;;  %v656_v6 = vand.u32 4294901760, %v2065_v31  ;;  %v663_v7 = vand.u32 4294901760, %v2079_v38 }
  0x3c   :  { %1662 = vmatprep.subr.bf16.mxu0 %v1961_v0  ;;  %v746_v22 = vsub.f32 %v59_v18, %v602_v20 }
  0x3d   :  { %1745 = vmatpush3.bf16.msra.mxu1 %v1744_v11 }
  0x3e   :  { %1394 = vmatmul.mubr.f32.vlgmr.msra.gmra.mrb[0].mxu0 %v2041_v21  ;;  %1746 = vmatprep.subr.bf16.mxu1 %v1961_v0  ;;  %v747_v44 = vand.u32 4294901760, %v746_v22 }
  0x3f   :  { %1664 = vmatpush3.bf16.msra.mxu0 %v1663_v8  ;;  %1404 = vmatprep.mubr.msk.f32.mxu0 %vm1962_vm0, %v1963_v1 }
  0x40   :  { %1665 = vmatprep.subr.bf16.mxu0 %v1961_v0  ;;  %v748_v48 = vsub.f32 %v746_v22, %v747_v44 }
  0x41   :  { %1748 = vmatpush3.bf16.msra.mxu1 %v1747_v35  ;;  %v664_v35 = vsub.f32 %v2079_v38, %v663_v7 }
  0x42   :  { %1749 = vmatprep.subr.bf16.mxu1 %v1961_v0  ;;  %v749_v50 = vand.u32 4294901760, %v748_v48 }
  0x43   :  { %1667 = vmatpush3.bf16.msra.mxu0 %v1666_v30  ;;  %v657_v30 = vsub.f32 %v2065_v31, %v656_v6 }
  0x44   :  { %1668 = vmatprep.subr.bf16.mxu0 %v1961_v0 }
  0x45   :  { %1751 = vmatpush3.bf16.msra.mxu1 %v1750_v39  ;;  %v670_v39 = vand.u32 4294901760, %v2100_v51 }
  0x46   :  { %1405 = vmatmul.mubr.f32.vlgmr.msra.gmra.mrb[0].mxu0 %v2050_v26  ;;  %1752 = vmatprep.subr.bf16.mxu1 %v1961_v0  ;;  %v605_v26 = vand.u32 4294901760, %v60_v23 }
  0x47   :  { %1670 = vmatpush3.bf16.msra.mxu0 %v2029_v15  ;;  %1415 = vmatprep.mubr.msk.f32.mxu0 %vm1962_vm0, %v1963_v1 }
  0x48   :  { %1671 = vmatprep.subr.bf16.mxu0 %v1961_v0  ;;  %v753_v33 = vsub.f32 %v60_v23, %v605_v26  ;;  %v2277_v42 = vpack.c.bf16 %v608_v27, %v605_v26 }
  0x4a   :  { %v754_v53 = vand.u32 4294901760, %v753_v33 }
  0x4b   :  { %1673 = vmatpush3.bf16.msra.mxu0 %v2037_v19 }
  0x4c   :  { %1674 = vmatprep.subr.bf16.mxu0 %v1961_v0  ;;  %v755_v56 = vsub.f32 %v753_v33, %v754_v53 }
  0x4e   :  { %1416 = vmatmul.mubr.f32.vlgmr.msra.gmra.mrb[0].mxu0 %v143_v34  ;;  %v760_v34 = vsub.f32 %v61_v24, %v608_v27  ;;  %v756_v58 = vand.u32 4294901760, %v755_v56  ;;  %v712_v56 = vand.u32 4294901760, %v2159_v12 }
  0x4f   :  { %1676 = vmatpush3.bf16.msra.mxu0 %v1675_v45  ;;  %1426 = vmatprep.mubr.msk.f32.mxu0 %vm1962_vm0, %v1963_v1  ;;  %v677_v45 = vand.u32 4294901760, %v2105_v52 }
  0x50   :  { %1677 = vmatprep.subr.bf16.mxu0 %v1961_v0  ;;  %v761_v54 = vand.u32 4294901760, %v760_v34 }
  0x51   :  { %v678_v23 = vsub.f32 %v2105_v52, %v677_v45 }
  0x52   :  { %v762_v57 = vsub.f32 %v760_v34, %v761_v54  ;;  %v2287_v2 = vpack.c.bf16 %v761_v54, %v754_v53 }
  0x53   :  { %1679 = vmatpush3.bf16.msra.mxu0 %v1678_v46 }
  0x54   :  { %1680 = vmatprep.subr.bf16.mxu0 %v1961_v0  ;;  %v763_v59 = vand.u32 4294901760, %v762_v57  ;;  %v719_v57 = vand.u32 4294901760, %v2164_v28 }
  0x56   :  { %1427 = vmatmul.mubr.f32.vlgmr.msra.gmra.mrb[0].mxu0 %v2041_v21  ;;  %v2283_v60 = vpack.c.bf16 %v763_v59, %v756_v58 }
  0x57   :  { %1682 = vmatpush3.bf16.msra.mxu0 %v2029_v15  ;;  %1437 = vmatprep.mubr.msk.f32.mxu0 %vm1962_vm0, %v1963_v1  ;;  %v2232_v15 = vpack.c.bf16 %v572_v41, %v569_v40  ;;  %v1756_v40 = vpack.c.bf16 %v760_v34, %v753_v33  ;;  %v698_v33 = vand.u32 4294901760, %v2137_v3  ;;  %v705_v34 = vand.u32 4294901760, %v2142_v4 }
  0x58   :  { %1683 = vmatprep.subr.bf16.mxu0 %v1961_v0 }
  0x59   :  { %v706_v53 = vsub.f32 %v2142_v4, %v705_v34  ;;  %v1792_v38 = vpack.c.bf16 %v705_v34, %v698_v33 }
  0x5b   :  { %1685 = vmatpush3.bf16.msra.mxu0 %v2037_v19  ;;  %v599_v19 = vand.u32 4294901760, %v58_v17 }
  0x5c   :  { %1686 = vmatprep.subr.bf16.mxu0 %v1961_v0 }
  0x5d   :  { %v2272_v41 = vpack.c.bf16 %v602_v20, %v599_v19  ;;  %v658_v20 = vand.u32 4294901760, %v657_v30 }
  0x5e   :  { %1438 = vmatmul.mubr.f32.vlgmr.msra.gmra.mrb[0].mxu0 %v2041_v21  ;;  %v739_v21 = vsub.f32 %v58_v17, %v599_v19  ;;  %v684_v17 = vand.u32 4294901760, %v2123_v61  ;;  %v691_v19 = vand.u32 4294901760, %v2128_v62 }
  0x5f   :  { %1688 = vmatpush3.bf16.msra.mxu0 %v2223_v16  ;;  %1472 = vmatprep.mubr.msk.f32.mxu0 %vm1962_vm0, %v1963_v1 }
  0x60   :  { %1689 = vmatprep.subr.bf16.mxu0 %v1961_v0  ;;  %v1753_v25 = vpack.c.bf16 %v746_v22, %v739_v21  ;;  %v740_v43 = vand.u32 4294901760, %v739_v21  ;;  %v671_v22 = vsub.f32 %v2100_v51, %v670_v39  ;;  %v692_v27 = vsub.f32 %v2128_v62, %v691_v19  ;;  %v1241_v62 = vld [vmem:[#allocation5 + $0xa8] ss:$0 sm:$0xff] }
  0x61   :  { %v1789_v31 = vpack.c.bf16 %v691_v19, %v684_v17  ;;  %v1795_v51 = vpack.c.bf16 %v719_v57, %v712_v56 }
  0x62   :  { %1754 = vmatpush3.bf16.msra.mxu1 %v1753_v25  ;;  %v741_v47 = vsub.f32 %v739_v21, %v740_v43  ;;  %v2285_v63 = vpack.c.bf16 %v747_v44, %v740_v43  ;;  %v665_v21 = vand.u32 4294901760, %v664_v35  ;;  %v685_v25 = vsub.f32 %v2123_v61, %v684_v17 }
  0x63   :  { %1691 = vmatpush3.bf16.msra.mxu0 %v2232_v15  ;;  %1755 = vmatprep.subr.bf16.mxu1 %v1961_v0  ;;  %v672_v43 = vand.u32 4294901760, %v671_v22  ;;  %v679_v44 = vand.u32 4294901760, %v678_v23 }
  0x64   :  { %1692 = vmatprep.subr.bf16.mxu0 %v1961_v0  ;;  %v742_v49 = vand.u32 4294901760, %v741_v47  ;;  %v686_v48 = vand.u32 4294901760, %v685_v25  ;;  %v1786_v25 = vpack.c.bf16 %v677_v45, %v670_v39 }
  0x65   :  { %v1714_v54 = vpack.c.bf16 %v679_v44, %v672_v43 }
  0x66   :  { %1757 = vmatpush3.bf16.msra.mxu1 %v1756_v40  ;;  %v2281_v55 = vpack.c.bf16 %v749_v50, %v742_v49  ;;  %v1711_v40 = vpack.c.bf16 %v665_v21, %v658_v20  ;;  %v693_v49 = vand.u32 4294901760, %v692_v27  ;;  %v699_v50 = vsub.f32 %v2137_v3, %v698_v33 }
  0x67   :  { %1694 = vmatpush3.bf16.msra.mxu0 %v2242_v10  ;;  %1758 = vmatprep.subr.bf16.mxu1 %v1961_v0 }
  0x68   :  { %1695 = vmatprep.subr.bf16.mxu0 %v1961_v0  ;;  %v1717_v58 = vpack.c.bf16 %v693_v49, %v686_v48  ;;  %v700_v59 = vand.u32 4294901760, %v699_v50 }
  0x6b   :  { %1697 = vmatpush3.bf16.msra.mxu0 %v2250_v13 }
  0x6c   :  { %1698 = vmatprep.subr.bf16.mxu0 %v1961_v0 }
  0x6f   :  { %1700 = vmatpush3.bf16.msra.mxu0 %v2258_v14 }
  0x70   :  { %1701 = vmatprep.subr.bf16.mxu0 %v1961_v0 }
  0x73   :  { %1703 = vmatpush3.bf16.msra.mxu0 %v2267_v32 }
  0x74   :  { %1704 = vmatprep.subr.bf16.mxu0 %v1961_v0 }
  0x77   :  { %1706 = vmatpush3.bf16.msra.mxu0 %v2272_v41 }
  0x78   :  { %1707 = vmatprep.subr.bf16.mxu0 %v1961_v0 }
  0x7b   :  { %1709 = vmatpush3.bf16.msra.mxu0 %v2277_v42 }
  0x7c   :  { %1710 = vmatprep.subr.bf16.mxu0 %v1961_v0 }
 0x131   :  { %v553_v8 = vpop.f32.mrb[0].mxu0 }
 0x132   :  { %v1830_v9 = vadd.f32 %v1240_v5, %v553_v8  ;;  %v1439_v11 = vpop.f32.mrb[1].mxu0  ;;  %v707_v5 = vand.u32 4294901760, %v706_v53  ;;  %v713_v8 = vsub.f32 %v2159_v12, %v712_v56 }
 0x133   :  { %v726_v11 = vand.u32 4294901760, %v2179_v36 }
 0x134   :  { %v557_v29 = vmax.f32 %v1830_v9, 0.0  ;;  %v720_v9 = vsub.f32 %v2164_v28, %v719_v57  ;;  %v1720_v30 = vpack.c.bf16 %v707_v5, %v700_v59  ;;  %v714_v35 = vand.u32 4294901760, %v713_v8 }
 0x135   :  { %v727_v21 = vsub.f32 %v2179_v36, %v726_v11 }
 0x136   :  { %v2299_v46 = vand.u32 4294901760, %v557_v29  ;;  %v721_v20 = vand.u32 4294901760, %v720_v9 }
 0x137   :  { %v728_v22 = vand.u32 4294901760, %v727_v21 }
 0x138   :  { %v2303_v18 = vsub.f32 %v557_v29, %v2299_v46  ;;  %v733_v29 = vand.u32 4294901760, %v2184_v37  ;;  %v1723_v28 = vpack.c.bf16 %v721_v20, %v714_v35 }
 0x13a   :  { %v645_v24 = vand.u32 4294901760, %v2303_v18  ;;  %1543 = vmatmul.mubr.f32.vlgmr.msra.gmra.mrb[0].mxu1 %v2303_v18  ;;  %v734_v12 = vsub.f32 %v2184_v37, %v733_v29  ;;  %v1783_v37 = vpack.c.bf16 %v663_v7, %v656_v6  ;;  %v1798_v52 = vpack.c.bf16 %v733_v29, %v726_v11 }
 0x13b   :  { %1760 = vmatpush3.bf16.msra.mxu1 %v2223_v16  ;;  %1577 = vmatprep.mubr.msk.f32.mxu1 %vm1962_vm0, %v1963_v1 }
 0x13c   :  { %v646_v26 = vsub.f32 %v2303_v18, %v645_v24  ;;  %1761 = vmatprep.subr.bf16.mxu1 %v1961_v0  ;;  %v735_v23 = vand.u32 4294901760, %v734_v12 }
 0x13e   :  { %v647_v47 = vand.u32 4294901760, %v646_v26  ;;  %v1726_v36 = vpack.c.bf16 %v735_v23, %v728_v22 }
 0x13f   :  { %1763 = vmatpush3.bf16.msra.mxu1 %v2232_v15 }
 0x140   :  { %1473 = vmatmul.mubr.f32.vlgmr.msra.gmra.mrb[2].mxu0 %v647_v47  ;;  %1764 = vmatprep.subr.bf16.mxu1 %v1961_v0 }
 0x141   :  { %1712 = vmatpush3.bf16.msra.mxu0 %v1711_v40  ;;  %1507 = vmatprep.mubr.msk.f32.mxu0 %vm1962_vm0, %v1963_v1 }
 0x142   :  { %1713 = vmatprep.subr.bf16.mxu0 %v1961_v0 }
 0x143   :  { %1766 = vmatpush3.bf16.msra.mxu1 %v2242_v10 }
 0x144   :  { %1767 = vmatprep.subr.bf16.mxu1 %v1961_v0 }
 0x145   :  { %1715 = vmatpush3.bf16.msra.mxu0 %v1714_v54 }
 0x146   :  { %1716 = vmatprep.subr.bf16.mxu0 %v1961_v0 }
 0x147   :  { %1769 = vmatpush3.bf16.msra.mxu1 %v2250_v13 }
 0x148   :  { %1770 = vmatprep.subr.bf16.mxu1 %v1961_v0 }
 0x149   :  { %1718 = vmatpush3.bf16.msra.mxu0 %v1717_v58 }
 0x14a   :  { %1719 = vmatprep.subr.bf16.mxu0 %v1961_v0 }
 0x14b   :  { %1772 = vmatpush3.bf16.msra.mxu1 %v2258_v14 }
 0x14c   :  { %1773 = vmatprep.subr.bf16.mxu1 %v1961_v0 }
 0x14d   :  { %1721 = vmatpush3.bf16.msra.mxu0 %v1720_v30 }
 0x14e   :  { %1722 = vmatprep.subr.bf16.mxu0 %v1961_v0 }
 0x14f   :  { %1775 = vmatpush3.bf16.msra.mxu1 %v2267_v32 }
 0x150   :  { %1776 = vmatprep.subr.bf16.mxu1 %v1961_v0 }
 0x151   :  { %1724 = vmatpush3.bf16.msra.mxu0 %v1723_v28 }
 0x152   :  { %1725 = vmatprep.subr.bf16.mxu0 %v1961_v0 }
 0x153   :  { %1778 = vmatpush3.bf16.msra.mxu1 %v2272_v41 }
 0x154   :  { %1779 = vmatprep.subr.bf16.mxu1 %v1961_v0 }
 0x155   :  { %1727 = vmatpush3.bf16.msra.mxu0 %v1726_v36 }
 0x156   :  { %1728 = vmatprep.subr.bf16.mxu0 %v1961_v0 }
 0x157   :  { %1781 = vmatpush3.bf16.msra.mxu1 %v2277_v42 }
 0x158   :  { %1782 = vmatprep.subr.bf16.mxu1 %v1961_v0 }
 0x159   :  { %1730 = vmatpush3.bf16.msra.mxu0 %v2281_v55 }
 0x15a   :  { %1578 = vmatmul.mubr.f32.vlgmr.msra.gmra.mrb[0].mxu1 %v645_v24  ;;  %1731 = vmatprep.subr.bf16.mxu0 %v1961_v0 }
 0x15b   :  { %1784 = vmatpush3.bf16.msra.mxu1 %v1783_v37  ;;  %1612 = vmatprep.mubr.msk.f32.mxu1 %vm1962_vm0, %v1963_v1 }
 0x15c   :  { %1785 = vmatprep.subr.bf16.mxu1 %v1961_v0 }
 0x15d   :  { %1733 = vmatpush3.bf16.msra.mxu0 %v2283_v60 }
 0x15f   :  { %1787 = vmatpush3.bf16.msra.mxu1 %v1786_v25 }
 0x160   :  { %1508 = vmatmul.mubr.f32.vlgmr.msra.gmra.mrb[2].mxu0 %v2299_v46  ;;  %1788 = vmatprep.subr.bf16.mxu1 %v1961_v0 }
 0x163   :  { %1790 = vmatpush3.bf16.msra.mxu1 %v1789_v31 }
 0x164   :  { %1791 = vmatprep.subr.bf16.mxu1 %v1961_v0 }
 0x167   :  { %1793 = vmatpush3.bf16.msra.mxu1 %v1792_v38 }
 0x168   :  { %1794 = vmatprep.subr.bf16.mxu1 %v1961_v0 }
 0x16b   :  { %1796 = vmatpush3.bf16.msra.mxu1 %v1795_v51 }
 0x16c   :  { %1797 = vmatprep.subr.bf16.mxu1 %v1961_v0 }
 0x16f   :  { %1799 = vmatpush3.bf16.msra.mxu1 %v1798_v52 }
 0x170   :  { %1800 = vmatprep.subr.bf16.mxu1 %v1961_v0 }
 0x173   :  { %1802 = vmatpush3.bf16.msra.mxu1 %v2285_v63 }
 0x174   :  { %1803 = vmatprep.subr.bf16.mxu1 %v1961_v0 }
 0x177   :  { %1805 = vmatpush3.bf16.msra.mxu1 %v2287_v2 }
 0x178   :  { %1806 = vmatprep.subr.bf16.mxu1 %v1961_v0 }
 0x17a   :  { %1613 = vmatmul.mubr.f32.vlgmr.msra.gmra.mrb[0].mxu1 %v2299_v46 }
 0x17b   :  { %1808 = vmatpush3.bf16.msra.mxu1 %v2223_v16  ;;  %1647 = vmatprep.mubr.msk.f32.mxu1 %vm1962_vm0, %v1963_v1 }
 0x17c   :  { %1809 = vmatprep.subr.bf16.mxu1 %v1961_v0 }
 0x17f   :  { %1811 = vmatpush3.bf16.msra.mxu1 %v2232_v15 }
 0x180   :  { %1812 = vmatprep.subr.bf16.mxu1 %v1961_v0 }
 0x183   :  { %1814 = vmatpush3.bf16.msra.mxu1 %v2242_v10 }
 0x184   :  { %1815 = vmatprep.subr.bf16.mxu1 %v1961_v0 }
 0x187   :  { %1817 = vmatpush3.bf16.msra.mxu1 %v2250_v13 }
 0x188   :  { %1818 = vmatprep.subr.bf16.mxu1 %v1961_v0 }
 0x18b   :  { %1820 = vmatpush3.bf16.msra.mxu1 %v2258_v14 }
 0x18c   :  { %1821 = vmatprep.subr.bf16.mxu1 %v1961_v0 }
 0x18f   :  { %1823 = vmatpush3.bf16.msra.mxu1 %v2267_v32 }
 0x190   :  { %1824 = vmatprep.subr.bf16.mxu1 %v1961_v0 }
 0x193   :  { %1826 = vmatpush3.bf16.msra.mxu1 %v2272_v41 }
 0x194   :  { %1827 = vmatprep.subr.bf16.mxu1 %v1961_v0 }
 0x197   :  { %1829 = vmatpush3.bf16.msra.mxu1 %v2277_v42 }
 0x19a   :  { %1648 = vmatmul.mubr.f32.vlgmr.msra.gmra.mrb[0].mxu1 %v2299_v46 }
 0x233   :  { %v800_v1 = vpop.f32.mrb[2].mxu0 }
 0x234   :  { %v1509_v61 = vpop.f32.mrb[3].mxu0  ;;  %v1831_v3 = vadd.f32 %v1241_v62, %v800_v1 }
 0x26d   :  { %v1199_v4 = vpop.f32.mrb[0].mxu1 }
 0x26e   :  { %v1832_v16 = vadd.f32 %v1831_v3, %v1199_v4  ;;  %v1649_v15 = vpop.f32.mrb[1].mxu1 }
 0x270   :  { %1206 = vrot.lane.b32.xlu0 %v1832_v16, %s1965_s11  ;;  %1204 = vst.msk [vmem:[#allocation7] sm:$0xff] %vm1203_vm2, %v1832_v16 }
 0x271   :  { %1916 = shalt.err (!%p1913_p6)
}
 0x272   :  { %s1917_s15 = scalar_lea.hbm %s2446_s2, 128 }
 0x273   :  { %p1918_p7 = scmp.ne.s32.totalorder %s2446_s2, %s1917_s15  ;;  %p1921_p8 = scmp.lt.u32.totalorder %s1917_s15, %s2446_s2 }
 0x275   :  { %p1923_p9 = pnand %p1921_p8, %p1918_p7 }
 0x277   :  { %1926 = shalt.err (!%p1923_p9)
}
 0x278   :  { %1219 = dma.vmem_to_hbm [thread:$0]  %s1217_s10, 128, %s2446_s2, [#allocation4]  }
 0x279   :  { %s1966_s22 = smov [#allocation8]  }
 0x27a   :  { %s1226_s23 = sshll.u32 %s1966_s22, 4  ;;  %s1227_s23 = int_to_ptr.vmem [resolvable:$true] %s1226_s23 }
 0x27b   :  { %s1927_s24 = scalar_lea.vmem %s1227_s23, 128  ;;  %p1932_p11 = scmp.lt.s32.totalorder %s1227_s23, %s1227_s23 }
 0x27c   :  { %p1928_p10 = scmp.ne.s32.totalorder %s1227_s23, %s1927_s24  ;;  %p1933_p12 = scmp.lt.s32.totalorder %s1927_s24, %s1927_s24 }
 0x27e   :  { %p1934_p13 = por %p1933_p12, %p1932_p11 }
 0x280   :  { %p1935_p0 = pnand %p1934_p13, %p1928_p10 }
 0x2e2   :  { %v1207_v0 = vpop.permute.xlu0 %1206 }
 0x2e3   :  { %1209 = vst.msk [vmem:[#allocation8] sm:$0xff] %vm1203_vm2, %v1207_v0 }
 0x2e4   :  { %1938 = shalt.err (!%p1935_p0)
}
 0x2e5   :  { %s1939_s27 = scalar_lea.hbm %s2447_s3, 128 }
 0x2e6   :  { %p1940_p1 = scmp.ne.s32.totalorder %s2447_s3, %s1939_s27  ;;  %p1943_p2 = scmp.lt.u32.totalorder %s1939_s27, %s2447_s3 }
 0x2e8   :  { %p1945_p3 = pnand %p1943_p2, %p1940_p1 }
 0x2ea   :  { %1948 = shalt.err (!%p1945_p3)
}
 0x2eb   :  { %1229 = dma.vmem_to_hbm [thread:$0]  %s1227_s23, 128, %s2447_s3, [#allocation9]  }
 0x2ec   :  { %1953 = dma.done.wait [#allocation4], 128  }
 0x2ed   :  { %1954 = vsyncadd [#allocation4], 4294967168 }
 0x2ee   :  { %1955 = dma.done.wait [#allocation9], 128  }
 0x2ef   :  { %1956 = vsyncadd [#allocation9], 4294967168 }
 0x2f0   :  { %1236 = vsyncpa [#allocation3], 1 }
 0x2f1   :  { %1237 = vsyncpa [#allocation6], 1 }
 0x2f2   :  { %1238 = vsyncpa [#allocation4], 1 }
 0x2f3   :  { %1239 = vsyncpa [#allocation9], 1 }

</bundles_post_ra>
